<compile_context>
chip_gen: v7x
topology: tpu7x:2x2x1
jax: 0.10.0
libtpu: 0.0.40
codegen_flags: <defaults>
</compile_context>

<pallas_src>
import jax
import jax.numpy as jnp
from jax.experimental import pallas as pl
from jax.experimental.pallas import tpu as pltpu


_LANES = 128           # lane width of a vreg; last dim of every block
_MAX_TILE_ROWS = 4096  # 4096x128xf32 = 2 MiB/block; in+out double-buffered = 8 MiB


def _round_up(x, m):
    return -(-x // m) * m


def _linear_kernel(x_ref, w_ref, b_ref, o_ref):
    # x_ref: (tile_rows, 128) VMEM tile; w_ref/b_ref: (1,) SMEM scalars.
    # Single VPU multiply-add per vreg; scalar broadcast from SMEM is free.
    o_ref[...] = x_ref[...] * w_ref[0] + b_ref[0]


def _run_lane_dense(x2d, weight, bias):
    """Apply y = x*w + b over a lane-dense (rows, 128) view."""
    rows, lanes = x2d.shape
    assert lanes == _LANES

    if rows <= 8:
        # Full-dim block: legal even when rows is not a multiple of 8.
        tile_rows = rows
    else:
        # Multiple of 8 (sublane packing), capped at 2 MiB, and sized so the
        # grid has >= 2 steps -> both v7x TensorCores get work.
        tile_rows = min(_MAX_TILE_ROWS, _round_up(pl.cdiv(rows, 2), 8))
    grid = (pl.cdiv(rows, tile_rows),)  # ragged last block is masked by Pallas

    total = rows * lanes
    return pl.pallas_call(
        _linear_kernel,
        out_shape=jax.ShapeDtypeStruct((rows, lanes), x2d.dtype),
        grid_spec=pltpu.PrefetchScalarGridSpec(
            num_scalar_prefetch=0,
            grid=grid,
            in_specs=[
                pl.BlockSpec((tile_rows, lanes), lambda i: (i, 0)),
                pl.BlockSpec(memory_space=pltpu.MemorySpace.SMEM),  # weight scalar
                pl.BlockSpec(memory_space=pltpu.MemorySpace.SMEM),  # bias scalar
            ],
            out_specs=pl.BlockSpec((tile_rows, lanes), lambda i: (i, 0)),
        ),
        compiler_params=pltpu.CompilerParams(
            dimension_semantics=("parallel",),  # shard batch tiles across TCs (v7x)
        ),
        cost_estimate=pl.CostEstimate(
            flops=2 * total, transcendentals=0, bytes_accessed=8 * total + 8),
    )(x2d, weight.reshape(1), bias.reshape(1))


def linear_regression_forward(x, weight, bias):
    """Forward of nn.Linear(1, 1): x (N, 1) f32, W (1, 1), b (1,) -> (N, 1)."""
    n, in_f = x.shape
    assert in_f == 1 and weight.shape == (1, 1) and bias.shape == (1,)

    x_flat = x.reshape(n)
    if n % _LANES == 0:
        # Fast path: contiguous reshapes are free; zero extra HBM traffic.
        y2d = _run_lane_dense(x_flat.reshape(n // _LANES, _LANES), weight, bias)
        return y2d.reshape(n, 1)

    # Ragged path: pad only to the next lane multiple (at most 127 elements);
    # the padded tail evaluates to 0*w + b and is sliced off below.
    padded_n = _round_up(n, _LANES)
    x_pad = jnp.pad(x_flat, (0, padded_n - n))
    y2d = _run_lane_dense(x_pad.reshape(padded_n // _LANES, _LANES), weight, bias)
    return y2d.reshape(padded_n)[:n].reshape(n, 1)


if __name__ == "__main__":
    key = jax.random.PRNGKey(0)
    kx, kw, kb = jax.random.split(key, 3)

    # Deterministic parameters (mimics PyTorch's U(-1, 1) init for in_features=1).
    weight = jax.random.uniform(kw, (1, 1), minval=-1.0, maxval=1.0,
                                dtype=jnp.float32)
    bias = jax.random.uniform(kb, (1,), minval=-1.0, maxval=1.0,
                              dtype=jnp.float32)

    ok = True
    # N=8: ragged path (single full-dim block); N=1024: aligned single block;
    # N=3072: aligned, 2 grid steps with a masked partial last row-block.
    for n in (8, 1024, 3072):
        xk = jax.random.fold_in(kx, n)
        x = jax.random.normal(xk, (n, 1), dtype=jnp.float32)
        out = jax.block_until_ready(linear_regression_forward(x, weight, bias))
        ref = x @ weight.T + bias
        ok &= out.shape == (n, 1)
        ok &= bool(jnp.allclose(out, ref, atol=1e-6, rtol=1e-6))
    assert ok
    print("KERNEL_OK")
</pallas_src>

<mosaic_0001>
module attributes {stable_mosaic.version = 11 : i64} {
  func.func @_linear_kernel(%arg0: i32, %arg1: memref<1x128xf32, #tpu.memory_space<vmem>>, %arg2: memref<1xf32, #tpu.memory_space<smem>>, %arg3: memref<1xf32, #tpu.memory_space<smem>>, %arg4: memref<1x128xf32, #tpu.memory_space<vmem>>) attributes {dimension_semantics = [#tpu.dimension_semantics<parallel>], iteration_bounds = array<i64: 1>, scalar_prefetch = 0 : i64, scratch_operands = 0 : i64, tpu.core_type = #tpu.core_type<tc>, window_params = [{transform_indices = @transform_0, window_bounds = array<i64: 1, 128>}, {transform_indices = @transform_1, window_bounds = array<i64: 1>}, {transform_indices = @transform_2, window_bounds = array<i64: 1>}, {transform_indices = @transform_3, window_bounds = array<i64: 1, 128>}]} {
    %c0 = arith.constant 0 : index
    %c0_0 = arith.constant 0 : index
    %0 = vector.load %arg1[%c0, %c0_0] : memref<1x128xf32, #tpu.memory_space<vmem>>, vector<1x128xf32>
    %c0_1 = arith.constant 0 : index
    %1 = memref.load %arg2[%c0_1] : memref<1xf32, #tpu.memory_space<smem>>
    %2 = vector.broadcast %1 : f32 to vector<1x128xf32>
    %3 = arith.mulf %0, %2 : vector<1x128xf32>
    %c0_2 = arith.constant 0 : index
    %4 = memref.load %arg3[%c0_2] : memref<1xf32, #tpu.memory_space<smem>>
    %5 = vector.broadcast %4 : f32 to vector<1x128xf32>
    %6 = arith.addf %3, %5 : vector<1x128xf32>
    %c0_3 = arith.constant 0 : index
    %c0_4 = arith.constant 0 : index
    %7 = vector.load %arg4[%c0_3, %c0_4] : memref<1x128xf32, #tpu.memory_space<vmem>>, vector<1x128xf32>
    tpu.vector_store %arg4[%c0_3, %c0_4], %6 {strides = array<i32>} : memref<1x128xf32, #tpu.memory_space<vmem>>, vector<1x128xf32>,
    return
  }
  func.func @transform_0(%arg0: i32) -> (i32, i32) {
    %c0_i32 = arith.constant 0 : i32
    %c0_i32_0 = arith.constant 0 : i32
    return %arg0, %c0_i32 : i32, i32
  }
  func.func @transform_1(%arg0: i32) -> i32 {
    %c0_i32 = arith.constant 0 : i32
    %c0_i32_0 = arith.constant 0 : i32
    return %c0_i32 : i32
  }
  func.func @transform_2(%arg0: i32) -> i32 {
    %c0_i32 = arith.constant 0 : i32
    %c0_i32_0 = arith.constant 0 : i32
    return %c0_i32 : i32
  }
  func.func @transform_3(%arg0: i32) -> (i32, i32) {
    %c0_i32 = arith.constant 0 : i32
    %c0_i32_0 = arith.constant 0 : i32
    return %arg0, %c0_i32 : i32, i32
  }
}

</mosaic_0001>

<bundles_post_ra>
// kernel: tpu_custom_call.1
= control target key start
LH: loop header
LB: loop body
LE: loop exit
PB: predicated region body
PF: predicated region fallthrough
CT: control target
= control target key end

     0   :  { %s106_s0 = inlined_call_operand.vmem [shape: f32[1,128], index: 0, kind: input, shape index: {}]   ;;  %s107_s1 = inlined_call_operand.<no memory space> [shape: f32[1], index: 1, kind: input, shape index: {}]   ;;  %s108_s2 = inlined_call_operand.<no memory space> [shape: f32[1], index: 2, kind: input, shape index: {}]   ;;  %s109_s3 = inlined_call_operand.hbm [shape: f32[1,128], index: 3, kind: output, shape index: {}]  }
   0x1   :  { %v17_v0 = vld [vmem:[%s106_s0] sm:$0x1]  ;;  %v19_v1 = vstv %s107_s1  ;;  %v22_v2 = vstv %s108_s2 }
   0x2   :  { %10 = vsyncpa [#allocation5], 0  ;;  %v20_v3 = vmul.f32 %v19_v1, %v17_v0  ;;  %s64_s18 = smov [#allocation4]  }
   0x3   :  { %s31_s19 = sshll.u32 %s64_s18, 4  ;;  %s32_s19 = int_to_ptr.vmem [resolvable:$true] %s31_s19 }
   0x4   :  { %v23_v4 = vadd.f32 %v22_v2, %v20_v3  ;;  %s40_s20 = scalar_lea.vmem %s32_s19, 16  ;;  %s44_s21 = scalar_lea.vmem %s32_s19, 32 }
   0x5   :  { %p41_p0 = scmp.ne.s32.totalorder %s32_s19, %s40_s20  ;;  %p45_p1 = scmp.lt.s32.totalorder %s32_s19, %s32_s19 }
   0x6   :  { %24 = vst [vmem:[#allocation4] sm:$0x1] %v23_v4  ;;  %p46_p2 = scmp.lt.s32.totalorder %s44_s21, %s40_s20 }
   0x8   :  { %p47_p3 = por %p46_p2, %p45_p1 }
   0xa   :  { %p48_p4 = pnand %p47_p3, %p41_p0 }
   0xc   :  { %51 = shalt.err (!%p48_p4)
}
   0xd   :  { %s52_s22 = scalar_lea.hbm %s109_s3, 16 }
   0xe   :  { %p53_p5 = scmp.ne.s32.totalorder %s109_s3, %s52_s22  ;;  %p56_p6 = scmp.lt.u32.totalorder %s52_s22, %s109_s3 }
  0x10   :  { %p58_p7 = pnand %p56_p6, %p53_p5 }
  0x12   :  { %61 = shalt.err (!%p58_p7)
}
  0x13   :  { %34 = dma.vmem_to_hbm [thread:$0]  %s32_s19, 16, %s109_s3, [#allocation5]  }
  0x14   :  { %62 = dma.done.wait [#allocation5], 16  }
  0x15   :  { %63 = vsyncadd [#allocation5], 4294967280 }
  0x16   :  { %38 = vsyncpa [#allocation5], 1 }

</bundles_post_ra>
